<compile_context>
chip_gen: v7x
topology: tpu7x:2x2x1
jax: 0.10.0
libtpu: 0.0.40
codegen_flags: <defaults>
</compile_context>

<pallas_src>
import jax
import jax.numpy as jnp
from jax.experimental import pallas as pl
from jax.experimental.pallas import tpu as pltpu


def _round_up(x, m):
    return (x + m - 1) // m * m


def _conv_stats_kernel(xcol_ref, w_ref, conv_ref, sum_ref, sumsq_ref):
    """One row tile of the im2col GEMM plus per-tile BN partial statistics.

    xcol_ref:  (TR, K)          im2col rows for this tile
    w_ref:     (K, Cout_pad)    flattened conv weight (resident across tiles)
    conv_ref:  (TR, Cout_pad)   f32 conv output tile (lane-dense)
    sum_ref:   (1, 1, Cout_pad) per-tile per-channel sum
    sumsq_ref: (1, 1, Cout_pad) per-tile per-channel sum of squares
    """
    acc = jnp.dot(xcol_ref[...], w_ref[...], preferred_element_type=jnp.float32)
    conv_ref[...] = acc
    sum_ref[...] = jnp.sum(acc, axis=0).reshape(1, 1, -1)
    sumsq_ref[...] = jnp.sum(acc * acc, axis=0).reshape(1, 1, -1)


def _bn_relu_kernel(conv_ref, scale_ref, shift_ref, o_ref):
    """Fused per-channel affine (folded BN) + ReLU over one row tile."""
    y = conv_ref[...] * scale_ref[...] + shift_ref[...]
    o_ref[...] = jnp.maximum(y, 0.0).astype(o_ref.dtype)


def _pick_row_tile(k_dim, cout_pad, in_bytes):
    """Largest row tile whose double-buffered working set fits comfortably in VMEM."""
    try:
        vmem_bytes = pltpu.get_tpu_info().vmem_capacity_bytes
    except Exception:
        vmem_bytes = 64 << 20  # conservative (v7x per-TC)
    budget = vmem_bytes // 4   # headroom for double buffering + compiler scratch
    for cand in (2048, 1024, 512, 256, 128):
        # pass 1: 2x (x_col tile) + 2x (conv out tile) + stats (tiny)
        # pass 2: 2x (conv in tile) + 2x (out tile)   -> covered by same bound
        need = 2 * cand * k_dim * in_bytes + 4 * cand * cout_pad * 4
        if need <= budget:
            return cand
    return 64


def basic_conv(x_nchw, weight_oihw, gamma, beta, *, stride=1, padding=0,
               eps=1e-5, compute_dtype=jnp.float32, row_tile=None):
    """Fused Conv2d(bias=False) + BatchNorm2d(train-mode) + ReLU.

    x_nchw:      (N, Cin, H, W)
    weight_oihw: (Cout, Cin, KH, KW)
    gamma, beta: (Cout,)
    returns:     (N, Cout, Ho, Wo) in NCHW, matching the PyTorch module.
    """
    N, Cin, H, W = x_nchw.shape
    Cout, _, KH, KW = weight_oihw.shape
    Ho = (H + 2 * padding - KH) // stride + 1
    Wo = (W + 2 * padding - KW) // stride + 1

    # ---- wrapper glue: layout, spatial padding, im2col ----------------------
    x_nhwc = jnp.transpose(x_nchw, (0, 2, 3, 1)).astype(compute_dtype)
    x_pad = jnp.pad(x_nhwc, ((0, 0), (padding, padding), (padding, padding), (0, 0)))

    cols = []
    for kh in range(KH):
        for kw in range(KW):
            cols.append(x_pad[:, kh: kh + (Ho - 1) * stride + 1: stride,
                              kw: kw + (Wo - 1) * stride + 1: stride, :])
    K = KH * KW * Cin
    x_col = jnp.concatenate(cols, axis=-1).reshape(N * Ho * Wo, K)

    Cout_pad = _round_up(Cout, 128)  # lane-dense output channels
    # HWIO weight flattened to (K, Cout_pad); K ordered (kh, kw, cin) to match x_col.
    w_col = jnp.transpose(weight_oihw, (2, 3, 1, 0)).reshape(K, Cout)
    w_col = jnp.pad(w_col, ((0, 0), (0, Cout_pad - Cout))).astype(compute_dtype)

    R = N * Ho * Wo
    in_bytes = jnp.dtype(compute_dtype).itemsize
    if row_tile is None:
        row_tile = _pick_row_tile(K, Cout_pad, in_bytes)
    row_tile = max(8, min(row_tile, _round_up(R, 8)))
    R_pad = _round_up(R, row_tile)
    # Zero-padded rows produce zero conv output, so they contribute nothing to
    # the sum / sum-of-squares; dividing by the true R keeps the stats exact.
    x_col = jnp.pad(x_col, ((0, R_pad - R), (0, 0)))
    n_tiles = R_pad // row_tile

    # ---- pass 1: tiled GEMM conv + per-tile BN partial stats ----------------
    conv_out, sum_t, sumsq_t = pl.pallas_call(
        _conv_stats_kernel,
        grid=(n_tiles,),
        in_specs=[
            pl.BlockSpec((row_tile, K), lambda i: (i, 0)),
            pl.BlockSpec((K, Cout_pad), lambda i: (0, 0)),
        ],
        out_specs=(
            pl.BlockSpec((row_tile, Cout_pad), lambda i: (i, 0)),
            pl.BlockSpec((1, 1, Cout_pad), lambda i: (i, 0, 0)),
            pl.BlockSpec((1, 1, Cout_pad), lambda i: (i, 0, 0)),
        ),
        out_shape=(
            jax.ShapeDtypeStruct((R_pad, Cout_pad), jnp.float32),
            jax.ShapeDtypeStruct((n_tiles, 1, Cout_pad), jnp.float32),
            jax.ShapeDtypeStruct((n_tiles, 1, Cout_pad), jnp.float32),
        ),
        compiler_params=pltpu.CompilerParams(
            dimension_semantics=("parallel",)),
    )(x_col, w_col)

    # ---- tiny per-channel math (exact PyTorch train-mode BN semantics) ------
    total = jnp.sum(sum_t, axis=(0, 1))          # (Cout_pad,)
    total_sq = jnp.sum(sumsq_t, axis=(0, 1))     # (Cout_pad,)
    mean = total / R
    var = jnp.maximum(total_sq / R - mean * mean, 0.0)   # biased variance
    inv_std = jax.lax.rsqrt(var + eps)
    gamma_pad = jnp.pad(gamma.astype(jnp.float32), (0, Cout_pad - Cout))
    beta_pad = jnp.pad(beta.astype(jnp.float32), (0, Cout_pad - Cout))
    scale_vec = gamma_pad * inv_std
    shift_vec = beta_pad - mean * scale_vec
    scale = scale_vec.reshape(1, Cout_pad)
    shift = shift_vec.reshape(1, Cout_pad)

    # ---- pass 2: fused normalize + affine + ReLU sweep ----------------------
    y = pl.pallas_call(
        _bn_relu_kernel,
        grid=(n_tiles,),
        in_specs=[
            pl.BlockSpec((row_tile, Cout_pad), lambda i: (i, 0)),
            pl.BlockSpec((1, Cout_pad), lambda i: (0, 0)),
            pl.BlockSpec((1, Cout_pad), lambda i: (0, 0)),
        ],
        out_specs=pl.BlockSpec((row_tile, Cout_pad), lambda i: (i, 0)),
        out_shape=jax.ShapeDtypeStruct((R_pad, Cout_pad), x_nchw.dtype),
        compiler_params=pltpu.CompilerParams(
            dimension_semantics=("parallel",)),
    )(conv_out, scale, shift)

    y = y[:R, :Cout].reshape(N, Ho, Wo, Cout)
    return jnp.transpose(y, (0, 3, 1, 2))


def _reference(x_nchw, weight_oihw, gamma, beta, *, stride, padding, eps=1e-5):
    """Plain-JAX reference replicating the PyTorch forward (train-mode BN)."""
    y = jax.lax.conv_general_dilated(
        x_nchw.astype(jnp.float32), weight_oihw.astype(jnp.float32),
        window_strides=(stride, stride),
        padding=((padding, padding), (padding, padding)),
        dimension_numbers=("NCHW", "OIHW", "NCHW"))
    mean = jnp.mean(y, axis=(0, 2, 3), keepdims=True)
    var = jnp.mean((y - mean) ** 2, axis=(0, 2, 3), keepdims=True)  # biased
    y = (y - mean) * jax.lax.rsqrt(var + eps)
    y = y * gamma.reshape(1, -1, 1, 1) + beta.reshape(1, -1, 1, 1)
    return jnp.maximum(y, 0.0)


if __name__ == "__main__":
    # Module config (BasicConv with a typical 3x3 same-padding conv).
    N, C_IN, H, W = 2, 4, 16, 16
    C_OUT, KSIZE, STRIDE, PAD = 8, 3, 1, 1

    key = jax.random.PRNGKey(0)
    kx, kw, kg, kb = jax.random.split(key, 4)

    x = jax.random.normal(kx, (N, C_IN, H, W), dtype=jnp.float32)
    weight = jax.random.normal(kw, (C_OUT, C_IN, KSIZE, KSIZE), dtype=jnp.float32) * 0.1
    gamma = 1.0 + 0.1 * jax.random.normal(kg, (C_OUT,), dtype=jnp.float32)
    beta = 0.1 * jax.random.normal(kb, (C_OUT,), dtype=jnp.float32)

    # row_tile=128 at this toy size gives a 4-step grid so the multi-tile
    # (two-pass BN stats) path is actually exercised; leave row_tile=None in
    # real use to auto-size from VMEM capacity.
    out = basic_conv(x, weight, gamma, beta, stride=STRIDE, padding=PAD,
                     row_tile=128)
    out = jax.block_until_ready(out)

    ref = _reference(x, weight, gamma, beta, stride=STRIDE, padding=PAD)
    assert out.shape == (N, C_OUT, H, W)
    err = jnp.max(jnp.abs(out - ref))
    assert jnp.allclose(out, ref, atol=5e-4, rtol=5e-4), f"max abs err = {err}"

    print("KERNEL_OK")
</pallas_src>

<mosaic_0001>
module attributes {stable_mosaic.version = 11 : i64} {
  func.func @_conv_stats_kernel(%arg0: i32, %arg1: memref<128x36xf32, #tpu.memory_space<vmem>>, %arg2: memref<36x128xf32, #tpu.memory_space<vmem>>, %arg3: memref<128x128xf32, #tpu.memory_space<vmem>>, %arg4: memref<1x1x128xf32, #tpu.memory_space<vmem>>, %arg5: memref<1x1x128xf32, #tpu.memory_space<vmem>>) attributes {dimension_semantics = [#tpu.dimension_semantics<parallel>], iteration_bounds = array<i64: 4>, scalar_prefetch = 0 : i64, scratch_operands = 0 : i64, tpu.core_type = #tpu.core_type<tc>, window_params = [{transform_indices = @transform_0, window_bounds = array<i64: 128, 36>}, {pipeline_mode = #tpu.pipeline_mode<synchronous>, transform_indices = @transform_1, window_bounds = array<i64: 36, 128>}, {transform_indices = @transform_2, window_bounds = array<i64: 128, 128>}, {transform_indices = @transform_3, window_bounds = array<i64: 1, 1, 128>}, {transform_indices = @transform_4, window_bounds = array<i64: 1, 1, 128>}]} {
    %c0 = arith.constant 0 : index
    %c0_0 = arith.constant 0 : index
    %0 = vector.load %arg1[%c0, %c0_0] : memref<128x36xf32, #tpu.memory_space<vmem>>, vector<128x36xf32>
    %c0_1 = arith.constant 0 : index
    %c0_2 = arith.constant 0 : index
    %1 = vector.load %arg2[%c0_1, %c0_2] : memref<36x128xf32, #tpu.memory_space<vmem>>, vector<36x128xf32>
    %cst = arith.constant dense<0.000000e+00> : vector<128x128xf32>
    %2 = tpu.matmul %0, %1, %cst {dimension_numbers = #tpu.dot_dimension_numbers<[1], [0], [0], [1], [0, 0, 1, 1], [], []>} : vector<128x36xf32>, vector<36x128xf32>, vector<128x128xf32> -> vector<128x128xf32>
    %c0_3 = arith.constant 0 : index
    %c0_4 = arith.constant 0 : index
    %3 = vector.load %arg3[%c0_3, %c0_4] : memref<128x128xf32, #tpu.memory_space<vmem>>, vector<128x128xf32>
    tpu.vector_store %arg3[%c0_3, %c0_4], %2 {strides = array<i32>} : memref<128x128xf32, #tpu.memory_space<vmem>>, vector<128x128xf32>,
    %cst_5 = arith.constant dense<0.000000e+00> : vector<128xf32>
    %4 = vector.multi_reduction <add>, %2, %cst_5 [0] : vector<128x128xf32> to vector<128xf32>
    %5 = vector.shape_cast %4 : vector<128xf32> to vector<1x1x128xf32>
    %c0_6 = arith.constant 0 : index
    %c0_7 = arith.constant 0 : index
    %c0_8 = arith.constant 0 : index
    %6 = vector.load %arg4[%c0_6, %c0_7, %c0_8] : memref<1x1x128xf32, #tpu.memory_space<vmem>>, vector<1x1x128xf32>
    tpu.vector_store %arg4[%c0_6, %c0_7, %c0_8], %5 {strides = array<i32>} : memref<1x1x128xf32, #tpu.memory_space<vmem>>, vector<1x1x128xf32>,
    %7 = arith.mulf %2, %2 : vector<128x128xf32>
    %cst_9 = arith.constant dense<0.000000e+00> : vector<128xf32>
    %8 = vector.multi_reduction <add>, %7, %cst_9 [0] : vector<128x128xf32> to vector<128xf32>
    %9 = vector.shape_cast %8 : vector<128xf32> to vector<1x1x128xf32>
    %c0_10 = arith.constant 0 : index
    %c0_11 = arith.constant 0 : index
    %c0_12 = arith.constant 0 : index
    %10 = vector.load %arg5[%c0_10, %c0_11, %c0_12] : memref<1x1x128xf32, #tpu.memory_space<vmem>>, vector<1x1x128xf32>
    tpu.vector_store %arg5[%c0_10, %c0_11, %c0_12], %9 {strides = array<i32>} : memref<1x1x128xf32, #tpu.memory_space<vmem>>, vector<1x1x128xf32>,
    return
  }
  func.func @transform_0(%arg0: i32) -> (i32, i32) {
    %c0_i32 = arith.constant 0 : i32
    %c0_i32_0 = arith.constant 0 : i32
    return %arg0, %c0_i32 : i32, i32
  }
  func.func @transform_1(%arg0: i32) -> (i32, i32) {
    %c0_i32 = arith.constant 0 : i32
    %c0_i32_0 = arith.constant 0 : i32
    %c0_i32_1 = arith.constant 0 : i32
    return %c0_i32, %c0_i32_0 : i32, i32
  }
  func.func @transform_2(%arg0: i32) -> (i32, i32) {
    %c0_i32 = arith.constant 0 : i32
    %c0_i32_0 = arith.constant 0 : i32
    return %arg0, %c0_i32 : i32, i32
  }
  func.func @transform_3(%arg0: i32) -> (i32, i32, i32) {
    %c0_i32 = arith.constant 0 : i32
    %c0_i32_0 = arith.constant 0 : i32
    %c0_i32_1 = arith.constant 0 : i32
    return %arg0, %c0_i32, %c0_i32_0 : i32, i32, i32
  }
  func.func @transform_4(%arg0: i32) -> (i32, i32, i32) {
    %c0_i32 = arith.constant 0 : i32
    %c0_i32_0 = arith.constant 0 : i32
    %c0_i32_1 = arith.constant 0 : i32
    return %arg0, %c0_i32, %c0_i32_0 : i32, i32, i32
  }
}

</mosaic_0001>

<bundles_post_ra>
// kernel: tpu_custom_call.1
= control target key start
LH: loop header
LB: loop body
LE: loop exit
PB: predicated region body
PF: predicated region fallthrough
CT: control target
= control target key end

     0   :  { %10 = vsyncpa [#allocation3], 0  ;;  %s1269_s0 = inlined_call_operand.vmem [shape: f32[512,36], index: 0, kind: input, shape index: {}]   ;;  %s1270_s1 = inlined_call_operand.vmem [shape: f32[36,128], index: 1, kind: input, shape index: {}]   ;;  %s1271_s2 = inlined_call_operand.hbm [shape: f32[512,128], index: 2, kind: output, shape index: {0}]   ;;  %s1272_s3 = inlined_call_operand.hbm [shape: f32[4,1,128], index: 3, kind: output, shape index: {1}]   ;;  %s1273_s4 = inlined_call_operand.hbm [shape: f32[4,1,128], index: 4, kind: output, shape index: {2}]  }
   0x1   :  { %12 = vsyncpa [#allocation3 + $0x1], 0 }
   0x2   :  { %13 = vsyncpa [#allocation5], 0 }
   0x3   :  { %15 = vsyncpa [#allocation5 + $0x1], 0  ;;  %s979_s15 = smov 0   ;;  %s981_s16 = smov 0  }
   0x4   :  { %s983_s17 = smov 0   ;;  %s985_s18 = smov 0  }
   0x5 LB: > { %s1000_s19 = sadd.s32 4294967295, %s947_s18   ;;  %s673_s20 = sadd.s32 4294967294, %s947_s18   ;;  %s947_s18 = sphi %s985_s18, %s1279_s18   ;;  %s943_s17 = sphi %s983_s17, %s1278_s17   ;;  %s939_s16 = sphi %s981_s16, %s1277_s16   ;;  %s935_s15 = sphi %s979_s15, %s1276_s15  }
   0x6   : > { %s1004_s21 = sadd.s32 1, %s947_s18   ;;  %s75_s22 = sadd.s32 1, %s943_s17 }
   0x7   : > { %s72_s23 = ssub.s32 %s947_s18, %s1004_s21  ;;  %p85_p0 = scmp.ne.s32.totalorder %s943_s17, %s939_s16 }
   0x8   : > { %p73_p1 = scmp.eq.s32.totalorder %s72_s23, 0  ;;  %p86_p2 = scmp.eq.s32.totalorder %s1000_s19, 3 }
   0x9   : > { %p91_p3 = scmp.ne.s32.totalorder %s939_s16, %s935_s15  ;;  %p92_p4 = scmp.eq.s32.totalorder %s673_s20, 3 }
   0xa   : > { %s1017_s24 = scalar_select %p73_p1, %s943_s17, %s75_s22  }
   0xb   : > { %p1019_p5 = por %p86_p2, %p85_p0  ;;  %p1023_p6 = por %p92_p4, %p91_p3 }
   0xc   : > { %p676_p7 = scmp.ge.s32.totalorder %s947_s18, 1  ;;  %p174_p8 = scmp.lt.s32.totalorder %s947_s18, 5 }
   0xe   : > { %p175_p9 = pnand %p676_p7, %p174_p8 }
   0xf   : > { %v231_v0 = vld [vmem:[%s1270_s1] sm:$0xff] (!%p175_p9)  ;;  %v232_v1 = vld [vmem:[%s1270_s1 + $0x8] sm:$0xff] (!%p175_p9)  ;;  %v233_v2 = vld [vmem:[%s1270_s1 + $0x10] sm:$0xff] (!%p175_p9)  ;;  %s1039_s7 = sshll.u32 (!%p175_p9), %s1000_s19, 4  ;;  %vm236_vm0 = vcmask (!%p175_p9), 293888   ;;  %vm285_vm1 = vcmask (!%p175_p9), 1043456  }
  0x10   : > { %178 = sbr.rel (%p175_p9) target bundleno = 333 (0x14d), region = 28  ;;  %v760_v3 = vpack.c.bf16 (!%p175_p9), %v232_v1, %v231_v0  ;;  %v234_v4 = vld [vmem:[%s1270_s1 + $0x18] sm:$0xff] (!%p175_p9)  ;;  %p209_p10 = scmp.lt.s32.totalorder (!%p175_p9), %s1039_s7, 63  ;;  %v235_v6 = vld [vmem:[%s1270_s1 + $0x20] sm:$0xf] (!%p175_p9) }
  0x11   : > { %v764_v5 = vpack.c.bf16 (!%p175_p9), %v234_v4, %v233_v2  ;;  %s1091_s27 = sand.u32 (!%p175_p9), 1, %s939_s16   ;;  %s704_s30 = sshll.u32 (!%p175_p9), %s1000_s19, 11 }
  0x12   : > { %761 = vmatprep.subr.bf16.mxu0 (!%p175_p9), %v760_v3  ;;  %768 = vmatprep.subr.bf16.mxu1 (!%p175_p9), %v760_v3  ;;  %s677_s28 = sshll.u32 (!%p175_p9), %s1091_s27, 7  ;;  %s1131_s9 = scalar_lea.hbm (!%p175_p9), %s1271_s2, %s704_s30 }
  0x13   : > { %763 = vmatpush3.bf16.msra.mxu0 (!%p175_p9), %v760_v3  ;;  %771 = vmatpush3.bf16.msra.mxu1 (!%p175_p9), %v760_v3  ;;  %s1094_s29 = scalar_lea.vmem (!%p175_p9), [#allocation2], %s677_s28  ;;  %s949_s12 = smov (!%p175_p9), [#allocation2]  }
  0x14   : > { %765 = vmatprep.subr.bf16.mxu0 (!%p175_p9), %v764_v5  ;;  %769 = vmatprep.subr.bf16.mxu1 (!%p175_p9), %v764_v5  ;;  %s532_s5 = sshll.u32 (!%p175_p9), %s1094_s29, 4  ;;  %s829_s13 = sshll.u32 (!%p175_p9), %s949_s12, 4  ;;  %s1133_s5 = int_to_ptr.vmem [resolvable:$true] %s532_s5  ;;  %s830_s13 = int_to_ptr.vmem [resolvable:$false] %s829_s13 }
  0x15   : > { %s831_s14 = scalar_lea.vmem (!%p175_p9), %s830_s13, 4096  ;;  %p832_p0 = scmp.lt.s32.totalorder (!%p175_p9), %s1133_s5, %s830_s13 }
  0x17   : > { %s210_s10 = scalar_select %p209_p10, %s1039_s7, 63  ;;  %767 = vmatpush3.bf16.msra.mxu0 %v764_v5  ;;  %772 = vmatpush3.bf16.msra.mxu1 %v764_v5 }
  0x18   : > { %734 = vmatprep.subr.msk.mxu0 %vm285_vm1, %v235_v6  ;;  %770 = vmatprep.subr.msk.mxu1 %vm285_vm1, %v235_v6 }
  0x19   : > { %s679_s11 = sshll.u32 %s210_s10, 3  ;;  %s511_s10 = scalar_lea.sflag [#allocation3], %s1091_s27 }
  0x1a   : > { %s1052_s23 = scalar_lea.vmem %s1269_s0, %s679_s11  ;;  %s825_s11 = scalar_lea.vmem %s1133_s5, 2048 }
  0x1b   : > { %v215_v7 = vld [vmem:[%s1052_s23] sm:$0xff]  ;;  %v216_v9 = vld [vmem:[%s1052_s23 + $0x8] sm:$0xff]  ;;  %v217_v10 = vld [vmem:[%s1052_s23 + $0x10] sm:$0xff]  ;;  %735 = vmatpush3.msk.msra.mxu0 %vm285_vm1, %v235_v6  ;;  %773 = vmatpush3.msk.msra.mxu1 %vm285_vm1, %v235_v6  ;;  %p826_p11 = scmp.ne.s32.totalorder %s1133_s5, %s825_s11  ;;  %p833_p1 = scmp.lt.s32.totalorder %s831_s14, %s825_s11 }
  0x1c   : > { %736 = vmatprep.mubr.msk.f32.mxu0 %vm236_vm0, %v215_v7  ;;  %v223_v8 = vld [vmem:[%s1052_s23 + $0x40] sm:$0xff]  ;;  %v224_v11 = vld [vmem:[%s1052_s23 + $0x48] sm:$0xff]  ;;  %v225_v12 = vld [vmem:[%s1052_s23 + $0x50] sm:$0xff] }
  0x1d   : > { %748 = vmatprep.mubr.msk.f32.mxu1 %vm236_vm0, %v223_v8  ;;  %737 = vmatmul.mubr.msk.f32.vlgmr.msra.gmra.mrb[0].mxu0 %vm236_vm0, %v216_v9  ;;  %v218_v13 = vld [vmem:[%s1052_s23 + $0x18] sm:$0xff]  ;;  %v219_v14 = vld [vmem:[%s1052_s23 + $0x20] sm:$0xff]  ;;  %v220_v17 = vld [vmem:[%s1052_s23 + $0x28] sm:$0xff]  ;;  %p827_p12 = pnand %p826_p11, %p1019_p5  ;;  %p834_p2 = por %p833_p1, %p832_p0 }
  0x1e   : > { %739 = vmatprep.mubr.msk.f32.mxu0 %vm236_vm0, %v217_v10  ;;  %749 = vmatmul.mubr.msk.f32.vlgmr.msra.gmra.mrb[0].mxu1 %vm236_vm0, %v224_v11  ;;  %v226_v15 = vld [vmem:[%s1052_s23 + $0x58] sm:$0xff]  ;;  %v227_v16 = vld [vmem:[%s1052_s23 + $0x60] sm:$0xff]  ;;  %v221_v18 = vld [vmem:[%s1052_s23 + $0x30] sm:$0xff] }
  0x1f   : > { %751 = vmatprep.mubr.msk.f32.mxu1 %vm236_vm0, %v225_v12  ;;  %v228_v19 = vld [vmem:[%s1052_s23 + $0x68] sm:$0xff]  ;;  %v229_v20 = vld [vmem:[%s1052_s23 + $0x70] sm:$0xff]  ;;  %v222_v21 = vld [vmem:[%s1052_s23 + $0x38] sm:$0xff]  ;;  %p828_p13 = pneg %p827_p12 }
  0x20   : > { %v230_v22 = vld [vmem:[%s1052_s23 + $0x78] sm:$0xff] }
  0x21   : > { %740 = vmatmul.mubr.msk.f32.gmra.mrb[2].mxu0 %vm236_vm0, %v218_v13  ;;  %p835_p3 = pnand %p834_p2, %p828_p13 }
  0x22   : > { %742 = vmatprep.mubr.msk.f32.mxu0 %vm236_vm0, %v219_v14  ;;  %752 = vmatmul.mubr.msk.f32.gmra.mrb[2].mxu1 %vm236_vm0, %v226_v15 }
  0x23   : > { %754 = vmatprep.mubr.msk.f32.mxu1 %vm236_vm0, %v227_v16 }
  0x25   : > { %743 = vmatmul.mubr.msk.f32.gmra.mrb[4].mxu0 %vm236_vm0, %v220_v17 }
  0x26   : > { %745 = vmatprep.mubr.msk.f32.mxu0 %vm236_vm0, %v221_v18  ;;  %755 = vmatmul.mubr.msk.f32.gmra.mrb[4].mxu1 %vm236_vm0, %v228_v19 }
  0x27   : > { %757 = vmatprep.mubr.msk.f32.mxu1 %vm236_vm0, %v229_v20 }
  0x29   : > { %746 = vmatmul.mubr.msk.f32.gmra.mrb[6].mxu0 %vm236_vm0, %v222_v21 }
  0x2a   : > { %758 = vmatmul.mubr.msk.f32.gmra.mrb[6].mxu1 %vm236_vm0, %v230_v22 }
  0xf0   : > { %v738_v23 = vpop.f32.mrb[0].mxu0 }
  0xf1   : > { %435 = vst [vmem:[%s1094_s29 + $0x8] sm:$0xff] %v738_v23  ;;  %v473_v24 = vmul.f32 %v738_v23, %v738_v23  ;;  %v355_v25 = vpop.f32.mrb[1].mxu0  ;;  %v1097_v26 = vpop.f32.mrb[0].mxu1 }
  0xf2   : > { %434 = vst [vmem:[%s1094_s29] sm:$0xff] %v355_v25  ;;  %v450_v27 = vadd.f32 %v738_v23, %v355_v25  ;;  %v472_v28 = vmul.f32 %v355_v25, %v355_v25  ;;  %443 = vst [vmem:[%s1094_s29 + $0x48] sm:$0xff] %v1097_v26  ;;  %v1102_v29 = vpop.f32.mrb[1].mxu1 }
  0xf3   : > { %442 = vst [vmem:[%s1094_s29 + $0x40] sm:$0xff] %v1102_v29  ;;  %v480_v60 = vmul.f32 %v1102_v29, %v1102_v29 }
  0xf4   : > { %v488_v30 = vadd.f32 %v473_v24, %v472_v28  ;;  %v741_v31 = vpop.f32.mrb[2].mxu0 }
  0xf5   : > { %437 = vst [vmem:[%s1094_s29 + $0x18] sm:$0xff] %v741_v31  ;;  %v365_v32 = vpop.f32.mrb[3].mxu0  ;;  %v1107_v33 = vpop.f32.mrb[2].mxu1  ;;  %v475_v37 = vmul.f32 %v741_v31, %v741_v31 }
  0xf6   : > { %436 = vst [vmem:[%s1094_s29 + $0x10] sm:$0xff] %v365_v32  ;;  %v451_v34 = vadd.f32 %v450_v27, %v365_v32  ;;  %v474_v35 = vmul.f32 %v365_v32, %v365_v32  ;;  %445 = vst [vmem:[%s1094_s29 + $0x58] sm:$0xff] %v1107_v33  ;;  %v1112_v36 = vpop.f32.mrb[3].mxu1 }
  0xf7   : > { %444 = vst [vmem:[%s1094_s29 + $0x50] sm:$0xff] %v1112_v36 }
  0xf8   : > { %v489_v38 = vadd.f32 %v488_v30, %v474_v35  ;;  %v744_v39 = vpop.f32.mrb[4].mxu0  ;;  %v452_v40 = vadd.f32 %v741_v31, %v451_v34 }
  0xf9   : > { %439 = vst [vmem:[%s1094_s29 + $0x28] sm:$0xff] %v744_v39  ;;  %v375_v41 = vpop.f32.mrb[5].mxu0  ;;  %v1117_v42 = vpop.f32.mrb[4].mxu1  ;;  %v477_v47 = vmul.f32 %v744_v39, %v744_v39 }
  0xfa   : > { %438 = vst [vmem:[%s1094_s29 + $0x20] sm:$0xff] %v375_v41  ;;  %v453_v43 = vadd.f32 %v452_v40, %v375_v41  ;;  %v476_v44 = vmul.f32 %v375_v41, %v375_v41  ;;  %v490_v45 = vadd.f32 %v489_v38, %v475_v37  ;;  %447 = vst [vmem:[%s1094_s29 + $0x68] sm:$0xff] %v1117_v42  ;;  %v1124_v46 = vpop.f32.mrb[5].mxu1 }
  0xfb   : > { %446 = vst [vmem:[%s1094_s29 + $0x60] sm:$0xff] %v1124_v46 }
  0xfc   : > { %v491_v48 = vadd.f32 %v490_v45, %v476_v44  ;;  %v747_v49 = vpop.f32.mrb[6].mxu0  ;;  %v454_v50 = vadd.f32 %v744_v39, %v453_v43 }
  0xfd   : > { %441 = vst [vmem:[%s1094_s29 + $0x38] sm:$0xff] %v747_v49  ;;  %v385_v51 = vpop.f32.mrb[7].mxu0  ;;  %v759_v52 = vpop.f32.mrb[6].mxu1  ;;  %v479_v57 = vmul.f32 %v747_v49, %v747_v49 }
  0xfe   : > { %440 = vst [vmem:[%s1094_s29 + $0x30] sm:$0xff] %v385_v51  ;;  %v455_v53 = vadd.f32 %v454_v50, %v385_v51  ;;  %v478_v54 = vmul.f32 %v385_v51, %v385_v51  ;;  %v492_v55 = vadd.f32 %v491_v48, %v477_v47  ;;  %449 = vst [vmem:[%s1094_s29 + $0x78] sm:$0xff] %v759_v52  ;;  %v425_v56 = vpop.f32.mrb[7].mxu1 }
  0xff   : > { %448 = vst [vmem:[%s1094_s29 + $0x70] sm:$0xff] %v425_v56 }
 0x100   : > { %v456_v58 = vadd.f32 %v747_v49, %v455_v53  ;;  %v493_v59 = vadd.f32 %v492_v55, %v478_v54 }
 0x101   : > { %838 = shalt.err (!%p835_p3)
}
 0x102   : > { %s839_s22 = scalar_lea.hbm %s1131_s9, 2048  ;;  %s843_s29 = scalar_lea.hbm %s1271_s2, 8192 }
 0x103   : > { %p840_p4 = scmp.ne.s32.totalorder %s1131_s9, %s839_s22  ;;  %p844_p9 = scmp.lt.u32.totalorder %s1131_s9, %s1271_s2 }
 0x104   : > { %p845_p10 = scmp.lt.u32.totalorder %s843_s29, %s839_s22  ;;  %p847_p12 = scmp.lt.u32.totalorder %s839_s22, %s1131_s9 }
 0x105   : > { %p841_p7 = pnand %p840_p4, %p1019_p5 }
 0x106   : > { %p846_p11 = por %p845_p10, %p844_p9 }
 0x107   : > { %p842_p8 = pneg %p841_p7 }
 0x108   : > { %p848_p13 = por %p847_p12, %p846_p11 }
 0x10a   : > { %p849_p0 = pnand %p848_p13, %p842_p8 }
 0x10c   : > { %852 = shalt.err (!%p849_p0)
}
 0x10d   : > { %s950_s8 = smov 128   ;;  %s951_s11 = smov 8   ;;  %v494_v61 = vadd.f32 %v493_v59, %v479_v57  ;;  %v457_v62 = vadd.f32 %v456_v58, %v1102_v29  ;;  %v481_v63 = vmul.f32 %v1097_v26, %v1097_v26  ;;  %v482_v2 = vmul.f32 %v1112_v36, %v1112_v36 }
 0x10e   : > { %774 = dma.vmem_to_hbm [thread:$0]  (%p1019_p5), %s1133_s5, 2048, %s1131_s9, %s511_s10, %s950_s8, %s950_s8, %s951_s11   ;;  %v483_v5 = vmul.f32 %v1107_v33, %v1107_v33  ;;  %v484_v8 = vmul.f32 %v1124_v46, %v1124_v46  ;;  %v485_v11 = vmul.f32 %v1117_v42, %v1117_v42  ;;  %v486_v14 = vmul.f32 %v425_v56, %v425_v56 }
 0x10f   : > { %v495_v0 = vadd.f32 %v494_v61, %v480_v60  ;;  %v458_v1 = vadd.f32 %v1097_v26, %v457_v62  ;;  %v487_v17 = vmul.f32 %v759_v52, %v759_v52  ;;  %s515_s5 = sand.u32 1, %s1000_s19   ;;  %s201_s9 = scalar_lea.vmem [#allocation4], %s1091_s27 }
 0x110   : > { %s548_s10 = sshll.u32 %s201_s9, 4  ;;  %s1187_s14 = scalar_lea.hbm %s1272_s3, %s1039_s7  ;;  %s1192_s10 = int_to_ptr.vmem [resolvable:$true] %s548_s10 }
 0x111   : > { %v459_v3 = vadd.f32 %v458_v1, %v1112_v36  ;;  %v496_v4 = vadd.f32 %v495_v0, %v481_v63  ;;  %s207_s22 = scalar_lea.vmem [#allocation6], %s1091_s27  ;;  %s1198_s29 = scalar_lea.hbm %s1273_s4, %s1039_s7 }
 0x112   : > { %s561_s23 = sshll.u32 %s207_s22, 4  ;;  %s1202_s30 = scalar_lea.sflag [#allocation5], %s515_s5  ;;  %s1200_s23 = int_to_ptr.vmem [resolvable:$true] %s561_s23 }
 0x113   : > { %v497_v6 = vadd.f32 %v496_v4, %v482_v2  ;;  %v460_v7 = vadd.f32 %v1107_v33, %v459_v3  ;;  %s853_s6 = scalar_lea.vmem %s1192_s10, 16  ;;  %s952_s8 = smov [#allocation4]  }
 0x114   : > { %p854_p1 = scmp.ne.s32.totalorder %s1192_s10, %s853_s6  ;;  %s857_s11 = sshll.u32 %s952_s8, 4  ;;  %s858_s11 = int_to_ptr.vmem [resolvable:$false] %s857_s11 }
 0x115   : > { %v461_v9 = vadd.f32 %v460_v7, %v1124_v46  ;;  %v498_v10 = vadd.f32 %v497_v6, %v483_v5  ;;  %s859_s12 = scalar_lea.vmem %s858_s11, 32  ;;  %p860_p4 = scmp.lt.s32.totalorder %s1192_s10, %s858_s11 }
 0x116   : > { %p855_p2 = pnand %p854_p1, %p1019_p5  ;;  %p861_p7 = scmp.lt.s32.totalorder %s859_s12, %s853_s6 }
 0x117   : > { %v499_v12 = vadd.f32 %v498_v10, %v484_v8  ;;  %v462_v13 = vadd.f32 %v1117_v42, %v461_v9 }
 0x118   : > { %p856_p3 = pneg %p855_p2  ;;  %p862_p8 = por %p861_p7, %p860_p4 }
 0x119   : > { %v463_v15 = vadd.f32 %v462_v13, %v425_v56  ;;  %v500_v16 = vadd.f32 %v499_v12, %v485_v11 }
 0x11a   : > { %p863_p9 = pnand %p862_p8, %p856_p3 }
 0x11b   : > { %v464_v18 = vadd.f32 %v759_v52, %v463_v15  ;;  %v501_v19 = vadd.f32 %v500_v16, %v486_v14 }
 0x11d   : > { %v465_v20 = vrot.slane %v464_v18, 4  ;;  %v502_v21 = vadd.f32 %v501_v19, %v487_v17 }
 0x11f   : > { %v466_v22 = vadd.f32 %v465_v20, %v464_v18  ;;  %v503_v23 = vrot.slane %v502_v21, 4 }
 0x121   : > { %v467_v24 = vrot.slane %v466_v22, 2  ;;  %v504_v25 = vadd.f32 %v503_v23, %v502_v21 }
 0x123   : > { %v505_v26 = vrot.slane %v504_v25, 2  ;;  %v468_v27 = vadd.f32 %v467_v24, %v466_v22 }
 0x125   : > { %v469_v28 = vrot.slane %v468_v27, 1  ;;  %v506_v29 = vadd.f32 %v505_v26, %v504_v25 }
 0x127   : > { %v470_v30 = vadd.f32 %v469_v28, %v468_v27  ;;  %v507_v31 = vrot.slane %v506_v29, 1 }
 0x129   : > { %471 = vst [vmem:[%s201_s9] sm:$0x1] %v470_v30  ;;  %v508_v32 = vadd.f32 %v507_v31, %v506_v29 }
 0x12a   : > { %866 = shalt.err (!%p863_p9)
}
 0x12b   : > { %s867_s7 = scalar_lea.hbm %s1187_s14, 16  ;;  %s871_s13 = scalar_lea.hbm %s1272_s3, 64 }
 0x12c   : > { %p868_p10 = scmp.ne.s32.totalorder %s1187_s14, %s867_s7  ;;  %p872_p13 = scmp.lt.u32.totalorder %s1187_s14, %s1272_s3 }
 0x12d   : > { %p873_p0 = scmp.lt.u32.totalorder %s871_s13, %s867_s7  ;;  %p875_p2 = scmp.lt.u32.totalorder %s867_s7, %s1187_s14 }
 0x12e   : > { %p869_p11 = pnand %p868_p10, %p1019_p5 }
 0x12f   : > { %p874_p1 = por %p873_p0, %p872_p13 }
 0x130   : > { %p870_p12 = pneg %p869_p11 }
 0x131   : > { %p876_p3 = por %p875_p2, %p874_p1 }
 0x133   : > { %p877_p4 = pnand %p876_p3, %p870_p12 }
 0x135   : > { %880 = shalt.err (!%p877_p4)
}
 0x136   : > { %775 = dma.vmem_to_hbm [thread:$0]  (%p1019_p5), %s1192_s10, 16, %s1187_s14, %s1202_s30   ;;  %509 = vst [vmem:[%s207_s22] sm:$0x1] %v508_v32 }
 0x137   : > { %s881_s6 = scalar_lea.vmem %s1200_s23, 16  ;;  %s953_s8 = smov [#allocation6]  }
 0x138   : > { %p882_p7 = scmp.ne.s32.totalorder %s1200_s23, %s881_s6  ;;  %s885_s11 = sshll.u32 %s953_s8, 4  ;;  %s886_s11 = int_to_ptr.vmem [resolvable:$false] %s885_s11 }
 0x139   : > { %s887_s12 = scalar_lea.vmem %s886_s11, 32  ;;  %p888_p10 = scmp.lt.s32.totalorder %s1200_s23, %s886_s11 }
 0x13a   : > { %p883_p8 = pnand %p882_p7, %p1019_p5  ;;  %p889_p11 = scmp.lt.s32.totalorder %s887_s12, %s881_s6 }
 0x13c   : > { %p884_p9 = pneg %p883_p8  ;;  %p890_p12 = por %p889_p11, %p888_p10 }
 0x13e   : > { %p891_p13 = pnand %p890_p12, %p884_p9 }
 0x140   : > { %894 = shalt.err (!%p891_p13)
}
 0x141   : > { %s895_s27 = scalar_lea.hbm %s1198_s29, 16  ;;  %s899_s22 = scalar_lea.hbm %s1273_s4, 64 }
 0x142   : > { %p896_p0 = scmp.ne.s32.totalorder %s1198_s29, %s895_s27  ;;  %p900_p3 = scmp.lt.u32.totalorder %s1198_s29, %s1273_s4 }
 0x143   : > { %p901_p4 = scmp.lt.u32.totalorder %s899_s22, %s895_s27  ;;  %p903_p8 = scmp.lt.u32.totalorder %s895_s27, %s1198_s29 }
 0x144   : > { %p897_p1 = pnand %p896_p0, %p1019_p5 }
 0x145   : > { %p902_p7 = por %p901_p4, %p900_p3 }
 0x146   : > { %p898_p2 = pneg %p897_p1 }
 0x147   : > { %p904_p9 = por %p903_p8, %p902_p7 }
 0x149   : > { %p905_p10 = pnand %p904_p9, %p898_p2 }
 0x14b   : > { %908 = shalt.err (!%p905_p10)
}
 0x14c   : > { %776 = dma.vmem_to_hbm [thread:$0]  (%p1019_p5), %s1200_s23, 16, %s1198_s29, %s1202_s30  }
 0x14d PF: > { %p790_p11 = scmp.ge.s32.totalorder %s947_s18, 2  ;;  %s573_s9 = sand.u32 1, %s935_s15  }
 0x14e   : > { %s574_s13 = scalar_lea.sflag [#allocation3], %s573_s9 }
 0x14f   : > { %p781_p12 = pnand %p790_p11, %p1023_p6 }
 0x151   : > { %926 = dma.done.wait (!%p781_p12), %s574_s13, 2048  }
 0x152   : > { %928 = vsyncadd (!%p781_p12), %s574_s13, 4294965248  ;;  %s582_s19 = sand.u32 1, %s673_s20  }
 0x153   : > { %s583_s28 = scalar_lea.sflag [#allocation5], %s582_s19 }
 0x154   : > { %930 = dma.done.wait (!%p781_p12), %s583_s28, 32  }
 0x155   : > { %932 = vsyncadd (!%p781_p12), %s583_s28, 4294967264  ;;  %p18_p5 = scmp.ge.s32.totalorder %s1004_s21, 6   ;;  %s1276_s15 = smov %s939_s16 }
 0x156   : > { %s1277_s16 = smov %s943_s17  ;;  %s1278_s17 = smov %s1017_s24 }
 0x157   : > { %s1279_s18 = smov %s1004_s21  ;;  %20 = sbr.rel (!%p18_p5) target bundleno = 5 (0x5), region = 95 }
 0x15e   :  { %595 = vsyncpa [#allocation3], 1 }
 0x15f   :  { %597 = vsyncpa [#allocation3 + $0x1], 1 }
 0x160   :  { %598 = vsyncpa [#allocation5], 1 }
 0x161   :  { %600 = vsyncpa [#allocation5 + $0x1], 1 }

</bundles_post_ra>
